<compile_context>
chip_gen: v5e
topology: v5e:2x2
jax: 0.10.0
libtpu: 0.0.40
codegen_flags: <defaults>
</compile_context>

<pallas_src>
import functools

import jax
import jax.numpy as jnp
from jax.experimental import pallas as pl
from jax.experimental.pallas import tpu as pltpu

EPS = 1e-5          # nn.BatchNorm2d default
NEG_SLOPE = 0.02    # LeakyReLU slope


def conv3x3_kernel(x_ref, w_ref, y_ref, s_ref, xbuf_ref, col_ref, *, W, pad):
    """3x3 'same' conv for one batch element as a single im2col matmul.

    x_ref:    (1, Cin, H*W)        flattened input image (lane-dense)
    w_ref:    (Cout, 9*Cin)        weights, K index = (kh*3+kw)*Cin + cin
    y_ref:    (1, Cout, H*W)       conv output (lane-dense)
    s_ref:    (1, Cout, 2)         per-image channel [sum, sum_of_squares]
    xbuf_ref: (Cin, H*W + 2*pad)   zero-padded flat line buffer (VMEM scratch)
    col_ref:  (9*Cin, H*W)         im2col patch matrix (VMEM scratch)
    """
    Cin, HW = x_ref.shape[1], x_ref.shape[2]

    # Zero-padded flat copy of the image: rows shifted out of range read zeros.
    xbuf_ref[...] = jnp.zeros_like(xbuf_ref)
    xbuf_ref[:, pad:pad + HW] = x_ref[0]

    # Column index of each flattened output position (lane axis); horizontal
    # shifts that cross a row boundary are masked to emulate width padding.
    colpos = jax.lax.broadcasted_iota(jnp.int32, (1, HW), 1) % W
    ok_left = colpos >= 1          # valid lanes when tap looks left  (dw = -1)
    ok_right = colpos < W - 1      # valid lanes when tap looks right (dw = +1)

    # Build the (9*Cin, H*W) im2col matrix in VMEM scratch.
    for kh in range(3):
        for kw in range(3):
            dh, dw = kh - 1, kw - 1
            off = dh * W + dw
            window = xbuf_ref[:, pad + off:pad + off + HW]   # (Cin, HW)
            if dw == -1:
                window = jnp.where(ok_left, window, 0.0)
            elif dw == 1:
                window = jnp.where(ok_right, window, 0.0)
            t = kh * 3 + kw
            col_ref[t * Cin:(t + 1) * Cin, :] = window

    # One MXU matmul over the fused K = 9*Cin contraction; output is
    # (Cout, H*W): lane-dense, unmasked stores.
    y = jnp.dot(w_ref[...], col_ref[...], preferred_element_type=jnp.float32)
    y_ref[0] = y.astype(y_ref.dtype)

    # Partial BatchNorm statistics (per image, per channel) — rides for free.
    s_ref[0, :, 0:1] = jnp.sum(y, axis=1, keepdims=True)
    s_ref[0, :, 1:2] = jnp.sum(y * y, axis=1, keepdims=True)


def bn_lrelu_kernel(y_ref, scale_ref, shift_ref, o_ref):
    """Folded BatchNorm affine + LeakyReLU(0.02), one batch element per step.

    y_ref:     (1, Cout, H*W)
    scale_ref: (Cout, 1)   gamma * rsqrt(var + eps)
    shift_ref: (Cout, 1)   beta - mean * scale
    o_ref:     (1, Cout, H*W)
    """
    yn = y_ref[0] * scale_ref[...] + shift_ref[...]
    o_ref[0] = jnp.where(yn >= 0, yn, NEG_SLOPE * yn).astype(o_ref.dtype)


def conv_bn_lrelu(x_nchw, w_oihw, gamma, beta):
    N, Cin, H, W = x_nchw.shape
    Cout = w_oihw.shape[0]
    HW = H * W
    pad = ((W + 1 + 127) // 128) * 128     # lane-aligned halo for the flat buffer

    x = x_nchw.reshape(N, Cin, HW).astype(jnp.float32)
    # (O, I, 3, 3) -> (O, 3, 3, I) -> (O, 9*I), matching the im2col row order.
    w = jnp.transpose(w_oihw, (0, 2, 3, 1)).reshape(Cout, 9 * Cin).astype(jnp.float32)

    conv_out, stats = pl.pallas_call(
        functools.partial(conv3x3_kernel, W=W, pad=pad),
        out_shape=(
            jax.ShapeDtypeStruct((N, Cout, HW), jnp.float32),
            jax.ShapeDtypeStruct((N, Cout, 2), jnp.float32),
        ),
        grid=(N,),
        in_specs=[
            pl.BlockSpec((1, Cin, HW), lambda n: (n, 0, 0)),
            pl.BlockSpec((Cout, 9 * Cin), lambda n: (0, 0)),
        ],
        out_specs=(
            pl.BlockSpec((1, Cout, HW), lambda n: (n, 0, 0)),
            pl.BlockSpec((1, Cout, 2), lambda n: (n, 0, 0)),
        ),
        scratch_shapes=[
            pltpu.VMEM((Cin, HW + 2 * pad), jnp.float32),
            pltpu.VMEM((9 * Cin, HW), jnp.float32),
        ],
        compiler_params=pltpu.CompilerParams(
            dimension_semantics=("parallel",),
            vmem_limit_bytes=32 * 1024 * 1024),
    )(x, w)

    # Finish the (tiny, O(N*Cout)) stats reduction and fold BN into scale/shift.
    cnt = jnp.float32(N * HW)
    ch_sum = jnp.sum(stats[:, :, 0], axis=0)
    ch_sumsq = jnp.sum(stats[:, :, 1], axis=0)
    mean = ch_sum / cnt
    var = ch_sumsq / cnt - mean * mean        # biased (training-mode) variance
    scale = gamma.astype(jnp.float32) * jax.lax.rsqrt(var + EPS)
    shift = beta.astype(jnp.float32) - mean * scale

    out = pl.pallas_call(
        bn_lrelu_kernel,
        out_shape=jax.ShapeDtypeStruct((N, Cout, HW), jnp.float32),
        grid=(N,),
        in_specs=[
            pl.BlockSpec((1, Cout, HW), lambda n: (n, 0, 0)),
            pl.BlockSpec((Cout, 1), lambda n: (0, 0)),
            pl.BlockSpec((Cout, 1), lambda n: (0, 0)),
        ],
        out_specs=pl.BlockSpec((1, Cout, HW), lambda n: (n, 0, 0)),
        compiler_params=pltpu.CompilerParams(
            dimension_semantics=("parallel",),
            vmem_limit_bytes=32 * 1024 * 1024),
    )(conv_out, scale.reshape(Cout, 1), shift.reshape(Cout, 1))

    return out.reshape(N, Cout, H, W)


def _reference(x_nchw, w_oihw, gamma, beta):
    """Pure-JAX reference for the same forward pass (NCHW)."""
    y = jax.lax.conv_general_dilated(
        x_nchw, w_oihw, window_strides=(1, 1), padding=((1, 1), (1, 1)),
        dimension_numbers=("NCHW", "OIHW", "NCHW"))
    mean = jnp.mean(y, axis=(0, 2, 3), keepdims=True)
    var = jnp.mean((y - mean) ** 2, axis=(0, 2, 3), keepdims=True)
    yn = (y - mean) * jax.lax.rsqrt(var + EPS)
    yn = yn * gamma.reshape(1, -1, 1, 1) + beta.reshape(1, -1, 1, 1)
    return jnp.where(yn >= 0, yn, NEG_SLOPE * yn)


if __name__ == "__main__":
    in_channels, out_channels = 4, 4   # mid_channels defaults to out_channels
    N, H, W = 2, 16, 16

    key = jax.random.PRNGKey(0)
    kx, kw = jax.random.split(key)
    x = jax.random.normal(kx, (N, in_channels, H, W), dtype=jnp.float32)
    w = jax.random.normal(kw, (out_channels, in_channels, 3, 3),
                          dtype=jnp.float32) * 0.1
    gamma = jnp.ones((out_channels,), dtype=jnp.float32)   # BN weight init
    beta = jnp.zeros((out_channels,), dtype=jnp.float32)   # BN bias init

    out = conv_bn_lrelu(x, w, gamma, beta)
    out = jax.block_until_ready(out)

    ref = _reference(x, w, gamma, beta)
    assert out.shape == (N, out_channels, H, W)
    assert jnp.allclose(out, ref, rtol=1e-4, atol=1e-4)
    print("KERNEL_OK")
</pallas_src>

<mosaic_0001>
module attributes {stable_mosaic.version = 11 : i64} {
  func.func @conv3x3_kernel(%arg0: i32, %arg1: memref<1x4x256xf32, #tpu.memory_space<vmem>>, %arg2: memref<4x36xf32, #tpu.memory_space<vmem>>, %arg3: memref<1x4x256xf32, #tpu.memory_space<vmem>>, %arg4: memref<1x4x2xf32, #tpu.memory_space<vmem>>, %arg5: memref<4x512xf32, #tpu.memory_space<vmem>>, %arg6: memref<36x256xf32, #tpu.memory_space<vmem>>) attributes {dimension_semantics = [#tpu.dimension_semantics<parallel>], iteration_bounds = array<i64: 2>, scalar_prefetch = 0 : i64, scratch_operands = 2 : i64, tpu.core_type = #tpu.core_type<tc>, window_params = [{transform_indices = @transform_0, window_bounds = array<i64: 1, 4, 256>}, {pipeline_mode = #tpu.pipeline_mode<synchronous>, transform_indices = @transform_1, window_bounds = array<i64: 4, 36>}, {transform_indices = @transform_2, window_bounds = array<i64: 1, 4, 256>}, {transform_indices = @transform_3, window_bounds = array<i64: 1, 4, 2>}]} {
    %cst = arith.constant 0.000000e+00 : f32
    %0 = vector.broadcast %cst : f32 to vector<4x512xf32>
    %c0 = arith.constant 0 : index
    %c0_0 = arith.constant 0 : index
    %1 = vector.load %arg5[%c0, %c0_0] : memref<4x512xf32, #tpu.memory_space<vmem>>, vector<4x512xf32>
    tpu.vector_store %arg5[%c0, %c0_0], %0 {strides = array<i32>} : memref<4x512xf32, #tpu.memory_space<vmem>>, vector<4x512xf32>,
    %c0_1 = arith.constant 0 : index
    %c0_2 = arith.constant 0 : index
    %c0_3 = arith.constant 0 : index
    %2 = vector.load %arg1[%c0_1, %c0_2, %c0_3] : memref<1x4x256xf32, #tpu.memory_space<vmem>>, vector<1x4x256xf32>
    %3 = vector.shape_cast %2 : vector<1x4x256xf32> to vector<4x256xf32>
    %c0_4 = arith.constant 0 : index
    %c128 = arith.constant 128 : index
    %4 = vector.load %arg5[%c0_4, %c128] : memref<4x512xf32, #tpu.memory_space<vmem>>, vector<4x256xf32>
    tpu.vector_store %arg5[%c0_4, %c128], %3 {strides = array<i32>} : memref<4x512xf32, #tpu.memory_space<vmem>>, vector<4x256xf32>,
    %5 = tpu.iota {dimensions = array<i32: 1>} : vector<1x256xi32>
    %c16_i32 = arith.constant 16 : i32
    %c0_i32 = arith.constant 0 : i32
    %6 = arith.cmpi eq, %c16_i32, %c0_i32 : i32
    %c1_i32 = arith.constant 1 : i32
    %7 = arith.select %6, %c1_i32, %c16_i32 : i32
    %8 = vector.broadcast %7 : i32 to vector<1x256xi32>
    %9 = arith.remsi %5, %8 : vector<1x256xi32>
    %c0_i32_5 = arith.constant 0 : i32
    %10 = vector.broadcast %c0_i32_5 : i32 to vector<1x256xi32>
    %11 = arith.cmpi ne, %9, %10 : vector<1x256xi32>
    %c0_i32_6 = arith.constant 0 : i32
    %12 = vector.broadcast %c0_i32_6 : i32 to vector<1x256xi32>
    %13 = arith.cmpi slt, %9, %12 : vector<1x256xi32>
    %c0_i32_7 = arith.constant 0 : i32
    %14 = arith.cmpi slt, %7, %c0_i32_7 : i32
    %15 = vector.broadcast %14 : i1 to vector<1x256xi1>
    %16 = vector.broadcast %15 : vector<1x256xi1> to vector<1x256xi1>
    %17 = arith.xori %13, %16 : vector<1x256xi1>
    %18 = arith.andi %17, %11 : vector<1x256xi1>
    %19 = vector.broadcast %7 : i32 to vector<1x256xi32>
    %20 = arith.addi %9, %19 : vector<1x256xi32>
    %21 = arith.select %18, %20, %9 : vector<1x256xi1>, vector<1x256xi32>
    %c1_i32_8 = arith.constant 1 : i32
    %22 = vector.broadcast %c1_i32_8 : i32 to vector<1x256xi32>
    %23 = arith.cmpi sge, %21, %22 : vector<1x256xi32>
    %c15_i32 = arith.constant 15 : i32
    %24 = vector.broadcast %c15_i32 : i32 to vector<1x256xi32>
    %25 = arith.cmpi slt, %21, %24 : vector<1x256xi32>
    %c0_9 = arith.constant 0 : index
    %c111 = arith.constant 111 : index
    %26 = vector.load %arg5[%c0_9, %c111] : memref<4x512xf32, #tpu.memory_space<vmem>>, vector<4x256xf32>
    %cst_10 = arith.constant 0.000000e+00 : f32
    %27 = vector.shape_cast %23 : vector<1x256xi1> to vector<1x256xi1>
    %28 = vector.broadcast %27 : vector<1x256xi1> to vector<4x256xi1>
    %29 = vector.broadcast %cst_10 : f32 to vector<4x256xf32>
    %30 = arith.select %28, %26, %29 : vector<4x256xi1>, vector<4x256xf32>
    %c0_11 = arith.constant 0 : index
    %c0_12 = arith.constant 0 : index
    %31 = vector.load %arg6[%c0_11, %c0_12] : memref<36x256xf32, #tpu.memory_space<vmem>>, vector<4x256xf32>
    tpu.vector_store %arg6[%c0_11, %c0_12], %30 {strides = array<i32>} : memref<36x256xf32, #tpu.memory_space<vmem>>, vector<4x256xf32>,
    %c0_13 = arith.constant 0 : index
    %c112 = arith.constant 112 : index
    %32 = vector.load %arg5[%c0_13, %c112] : memref<4x512xf32, #tpu.memory_space<vmem>>, vector<4x256xf32>
    %c4 = arith.constant 4 : index
    %c0_14 = arith.constant 0 : index
    %33 = vector.load %arg6[%c4, %c0_14] : memref<36x256xf32, #tpu.memory_space<vmem>>, vector<4x256xf32>
    tpu.vector_store %arg6[%c4, %c0_14], %32 {strides = array<i32>} : memref<36x256xf32, #tpu.memory_space<vmem>>, vector<4x256xf32>,
    %c0_15 = arith.constant 0 : index
    %c113 = arith.constant 113 : index
    %34 = vector.load %arg5[%c0_15, %c113] : memref<4x512xf32, #tpu.memory_space<vmem>>, vector<4x256xf32>
    %cst_16 = arith.constant 0.000000e+00 : f32
    %35 = vector.shape_cast %25 : vector<1x256xi1> to vector<1x256xi1>
    %36 = vector.broadcast %35 : vector<1x256xi1> to vector<4x256xi1>
    %37 = vector.broadcast %cst_16 : f32 to vector<4x256xf32>
    %38 = arith.select %36, %34, %37 : vector<4x256xi1>, vector<4x256xf32>
    %c8 = arith.constant 8 : index
    %c0_17 = arith.constant 0 : index
    %39 = vector.load %arg6[%c8, %c0_17] : memref<36x256xf32, #tpu.memory_space<vmem>>, vector<4x256xf32>
    tpu.vector_store %arg6[%c8, %c0_17], %38 {strides = array<i32>} : memref<36x256xf32, #tpu.memory_space<vmem>>, vector<4x256xf32>,
    %c0_18 = arith.constant 0 : index
    %c127 = arith.constant 127 : index
    %40 = vector.load %arg5[%c0_18, %c127] : memref<4x512xf32, #tpu.memory_space<vmem>>, vector<4x256xf32>
    %cst_19 = arith.constant 0.000000e+00 : f32
    %41 = vector.shape_cast %23 : vector<1x256xi1> to vector<1x256xi1>
    %42 = vector.broadcast %41 : vector<1x256xi1> to vector<4x256xi1>
    %43 = vector.broadcast %cst_19 : f32 to vector<4x256xf32>
    %44 = arith.select %42, %40, %43 : vector<4x256xi1>, vector<4x256xf32>
    %c12 = arith.constant 12 : index
    %c0_20 = arith.constant 0 : index
    %45 = vector.load %arg6[%c12, %c0_20] : memref<36x256xf32, #tpu.memory_space<vmem>>, vector<4x256xf32>
    tpu.vector_store %arg6[%c12, %c0_20], %44 {strides = array<i32>} : memref<36x256xf32, #tpu.memory_space<vmem>>, vector<4x256xf32>,
    %c0_21 = arith.constant 0 : index
    %c128_22 = arith.constant 128 : index
    %46 = vector.load %arg5[%c0_21, %c128_22] : memref<4x512xf32, #tpu.memory_space<vmem>>, vector<4x256xf32>
    %c16 = arith.constant 16 : index
    %c0_23 = arith.constant 0 : index
    %47 = vector.load %arg6[%c16, %c0_23] : memref<36x256xf32, #tpu.memory_space<vmem>>, vector<4x256xf32>
    tpu.vector_store %arg6[%c16, %c0_23], %46 {strides = array<i32>} : memref<36x256xf32, #tpu.memory_space<vmem>>, vector<4x256xf32>,
    %c0_24 = arith.constant 0 : index
    %c129 = arith.constant 129 : index
    %48 = vector.load %arg5[%c0_24, %c129] : memref<4x512xf32, #tpu.memory_space<vmem>>, vector<4x256xf32>
    %cst_25 = arith.constant 0.000000e+00 : f32
    %49 = vector.shape_cast %25 : vector<1x256xi1> to vector<1x256xi1>
    %50 = vector.broadcast %49 : vector<1x256xi1> to vector<4x256xi1>
    %51 = vector.broadcast %cst_25 : f32 to vector<4x256xf32>
    %52 = arith.select %50, %48, %51 : vector<4x256xi1>, vector<4x256xf32>
    %c20 = arith.constant 20 : index
    %c0_26 = arith.constant 0 : index
    %53 = vector.load %arg6[%c20, %c0_26] : memref<36x256xf32, #tpu.memory_space<vmem>>, vector<4x256xf32>
    tpu.vector_store %arg6[%c20, %c0_26], %52 {strides = array<i32>} : memref<36x256xf32, #tpu.memory_space<vmem>>, vector<4x256xf32>,
    %c0_27 = arith.constant 0 : index
    %c143 = arith.constant 143 : index
    %54 = vector.load %arg5[%c0_27, %c143] : memref<4x512xf32, #tpu.memory_space<vmem>>, vector<4x256xf32>
    %cst_28 = arith.constant 0.000000e+00 : f32
    %55 = vector.shape_cast %23 : vector<1x256xi1> to vector<1x256xi1>
    %56 = vector.broadcast %55 : vector<1x256xi1> to vector<4x256xi1>
    %57 = vector.broadcast %cst_28 : f32 to vector<4x256xf32>
    %58 = arith.select %56, %54, %57 : vector<4x256xi1>, vector<4x256xf32>
    %c24 = arith.constant 24 : index
    %c0_29 = arith.constant 0 : index
    %59 = vector.load %arg6[%c24, %c0_29] : memref<36x256xf32, #tpu.memory_space<vmem>>, vector<4x256xf32>
    tpu.vector_store %arg6[%c24, %c0_29], %58 {strides = array<i32>} : memref<36x256xf32, #tpu.memory_space<vmem>>, vector<4x256xf32>,
    %c0_30 = arith.constant 0 : index
    %c144 = arith.constant 144 : index
    %60 = vector.load %arg5[%c0_30, %c144] : memref<4x512xf32, #tpu.memory_space<vmem>>, vector<4x256xf32>
    %c28 = arith.constant 28 : index
    %c0_31 = arith.constant 0 : index
    %61 = vector.load %arg6[%c28, %c0_31] : memref<36x256xf32, #tpu.memory_space<vmem>>, vector<4x256xf32>
    tpu.vector_store %arg6[%c28, %c0_31], %60 {strides = array<i32>} : memref<36x256xf32, #tpu.memory_space<vmem>>, vector<4x256xf32>,
    %c0_32 = arith.constant 0 : index
    %c145 = arith.constant 145 : index
    %62 = vector.load %arg5[%c0_32, %c145] : memref<4x512xf32, #tpu.memory_space<vmem>>, vector<4x256xf32>
    %cst_33 = arith.constant 0.000000e+00 : f32
    %63 = vector.shape_cast %25 : vector<1x256xi1> to vector<1x256xi1>
    %64 = vector.broadcast %63 : vector<1x256xi1> to vector<4x256xi1>
    %65 = vector.broadcast %cst_33 : f32 to vector<4x256xf32>
    %66 = arith.select %64, %62, %65 : vector<4x256xi1>, vector<4x256xf32>
    %c32 = arith.constant 32 : index
    %c0_34 = arith.constant 0 : index
    %67 = vector.load %arg6[%c32, %c0_34] : memref<36x256xf32, #tpu.memory_space<vmem>>, vector<4x256xf32>
    tpu.vector_store %arg6[%c32, %c0_34], %66 {strides = array<i32>} : memref<36x256xf32, #tpu.memory_space<vmem>>, vector<4x256xf32>,
    %c0_35 = arith.constant 0 : index
    %c0_36 = arith.constant 0 : index
    %68 = vector.load %arg2[%c0_35, %c0_36] : memref<4x36xf32, #tpu.memory_space<vmem>>, vector<4x36xf32>
    %c0_37 = arith.constant 0 : index
    %c0_38 = arith.constant 0 : index
    %69 = vector.load %arg6[%c0_37, %c0_38] : memref<36x256xf32, #tpu.memory_space<vmem>>, vector<36x256xf32>
    %cst_39 = arith.constant dense<0.000000e+00> : vector<4x256xf32>
    %70 = tpu.matmul %68, %69, %cst_39 {dimension_numbers = #tpu.dot_dimension_numbers<[1], [0], [0], [1], [0, 0, 1, 1], [], []>} : vector<4x36xf32>, vector<36x256xf32>, vector<4x256xf32> -> vector<4x256xf32>
    %c0_40 = arith.constant 0 : index
    %c0_41 = arith.constant 0 : index
    %c0_42 = arith.constant 0 : index
    %71 = vector.load %arg3[%c0_40, %c0_41, %c0_42] : memref<1x4x256xf32, #tpu.memory_space<vmem>>, vector<1x4x256xf32>
    %72 = vector.shape_cast %71 : vector<1x4x256xf32> to vector<4x256xf32>
    %73 = vector.shape_cast %70 : vector<4x256xf32> to vector<1x4x256xf32>
    tpu.vector_store %arg3[%c0_40, %c0_41, %c0_42], %73 {strides = array<i32>} : memref<1x4x256xf32, #tpu.memory_space<vmem>>, vector<1x4x256xf32>,
    %cst_43 = arith.constant dense<0.000000e+00> : vector<4xf32>
    %74 = vector.multi_reduction <add>, %70, %cst_43 [1] : vector<4x256xf32> to vector<4xf32>
    %75 = vector.shape_cast %74 : vector<4xf32> to vector<4x1xf32>
    %c0_44 = arith.constant 0 : index
    %c0_45 = arith.constant 0 : index
    %c0_46 = arith.constant 0 : index
    %76 = vector.load %arg4[%c0_44, %c0_45, %c0_46] : memref<1x4x2xf32, #tpu.memory_space<vmem>>, vector<1x4x1xf32>
    %77 = vector.shape_cast %76 : vector<1x4x1xf32> to vector<4x1xf32>
    %78 = vector.shape_cast %75 : vector<4x1xf32> to vector<1x4x1xf32>
    tpu.vector_store %arg4[%c0_44, %c0_45, %c0_46], %78 {strides = array<i32>} : memref<1x4x2xf32, #tpu.memory_space<vmem>>, vector<1x4x1xf32>,
    %79 = arith.mulf %70, %70 : vector<4x256xf32>
    %cst_47 = arith.constant dense<0.000000e+00> : vector<4xf32>
    %80 = vector.multi_reduction <add>, %79, %cst_47 [1] : vector<4x256xf32> to vector<4xf32>
    %81 = vector.shape_cast %80 : vector<4xf32> to vector<4x1xf32>
    %c0_48 = arith.constant 0 : index
    %c0_49 = arith.constant 0 : index
    %c1 = arith.constant 1 : index
    %82 = vector.load %arg4[%c0_48, %c0_49, %c1] : memref<1x4x2xf32, #tpu.memory_space<vmem>>, vector<1x4x1xf32>
    %83 = vector.shape_cast %82 : vector<1x4x1xf32> to vector<4x1xf32>
    %84 = vector.shape_cast %81 : vector<4x1xf32> to vector<1x4x1xf32>
    tpu.vector_store %arg4[%c0_48, %c0_49, %c1], %84 {strides = array<i32>} : memref<1x4x2xf32, #tpu.memory_space<vmem>>, vector<1x4x1xf32>,
    return
  }
  func.func @transform_0(%arg0: i32) -> (i32, i32, i32) {
    %c0_i32 = arith.constant 0 : i32
    %c0_i32_0 = arith.constant 0 : i32
    %c0_i32_1 = arith.constant 0 : i32
    return %arg0, %c0_i32, %c0_i32_0 : i32, i32, i32
  }
  func.func @transform_1(%arg0: i32) -> (i32, i32) {
    %c0_i32 = arith.constant 0 : i32
    %c0_i32_0 = arith.constant 0 : i32
    %c0_i32_1 = arith.constant 0 : i32
    return %c0_i32, %c0_i32_0 : i32, i32
  }
  func.func @transform_2(%arg0: i32) -> (i32, i32, i32) {
    %c0_i32 = arith.constant 0 : i32
    %c0_i32_0 = arith.constant 0 : i32
    %c0_i32_1 = arith.constant 0 : i32
    return %arg0, %c0_i32, %c0_i32_0 : i32, i32, i32
  }
  func.func @transform_3(%arg0: i32) -> (i32, i32, i32) {
    %c0_i32 = arith.constant 0 : i32
    %c0_i32_0 = arith.constant 0 : i32
    %c0_i32_1 = arith.constant 0 : i32
    return %arg0, %c0_i32, %c0_i32_0 : i32, i32, i32
  }
}

</mosaic_0001>

<bundles_post_ra>
// kernel: tpu_custom_call.1
= control target key start
LH: loop header
LB: loop body
LE: loop exit
PB: predicated region body
PF: predicated region fallthrough
CT: control target
= control target key end

     0   :  { %9 = vsyncpa [#allocation5], 0  ;;  %s1166_s0 = inlined_call_operand.hbm [shape: f32[2,4,256], index: 0, kind: input, shape index: {}]   ;;  %s1167_s1 = inlined_call_operand.hbm [shape: f32[4,36], index: 1, kind: input, shape index: {}]   ;;  %s1168_s2 = inlined_call_operand.hbm [shape: f32[2,4,256], index: 2, kind: output, shape index: {0}]   ;;  %s1169_s3 = inlined_call_operand.vmem [shape: f32[2,4,2], index: 3, kind: output, shape index: {1}]  }
   0x1   :  { %11 = vsyncpa [#allocation5 + $0x1], 0 }
   0x2   :  { %12 = vsyncpa [#allocation8], 0 }
   0x3   :  { %13 = vsyncpa [#allocation6], 0 }
   0x4   :  { %15 = vsyncpa [#allocation6 + $0x1], 0  ;;  %s940_s12 = smov 0   ;;  %s942_s13 = smov 0  }
   0x5   :  { %s944_s14 = smov 0   ;;  %s946_s15 = smov 0  }
   0x6 LB: > { %s961_s16 = sadd.s32 4294967295, %s908_s15   ;;  %s689_s17 = sadd.s32 4294967294, %s908_s15   ;;  %s908_s15 = sphi %s946_s15, %s1187_s15   ;;  %s904_s14 = sphi %s944_s14, %s1186_s14   ;;  %s900_s13 = sphi %s942_s13, %s1185_s13   ;;  %s896_s12 = sphi %s940_s12, %s1184_s12  }
   0x7   : > { %p41_p0 = scmp.ne.s32.totalorder %s900_s13, %s896_s12  ;;  %p42_p1 = scmp.eq.s32.totalorder %s961_s16, 0 }
   0x8   : > { %p86_p2 = scmp.eq.s32.totalorder %s961_s16, 1  ;;  %p92_p3 = scmp.eq.s32.totalorder %s689_s17, 1 }
   0x9   : > { %p970_p4 = por %p42_p1, %p41_p0  ;;  %p690_p5 = scmp.ge.s32.totalorder %s908_s15, 1 }
   0xa   : > { %p975_p6 = por %p92_p3, %p41_p0  ;;  %p125_p7 = scmp.lt.s32.totalorder %s908_s15, 3 }
   0xb   : > { %s137_s22 = sshll.u32 %s1167_s1, 4  ;;  %s910_s24 = smov [#allocation7]   ;;  %s138_s22 = int_to_ptr.hbm [resolvable:$true] %s137_s22 }
   0xc   : > { %p983_p8 = pnand %p690_p5, %p125_p7  ;;  %s139_s25 = sshll.u32 %s910_s24, 4  ;;  %s140_s25 = int_to_ptr.vmem [resolvable:$true] %s139_s25 }
   0xd   : > { %s993_s26 = sadd.s32 1, %s908_s15   ;;  %s28_s27 = sadd.s32 1, %s904_s14 }
   0xe   : > { %p720_p10 = pneg %p983_p8  ;;  %s25_s28 = ssub.s32 %s908_s15, %s993_s26 }
   0xf   : > { %p26_p12 = scmp.eq.s32.totalorder %s25_s28, 0  ;;  %p35_p13 = scmp.ne.s32.totalorder %s904_s14, %s900_s13 }
  0x10   : > { %p721_p11 = pnand %p720_p10, %p42_p1  ;;  %p36_p0 = scmp.eq.s32.totalorder %s908_s15, 0 }
  0x11   : > { %s1002_s29 = scalar_select %p26_p12, %s904_s14, %s28_s27  }
  0x12   : > { %723 = dma.hbm_to_vmem [thread:$0]  (!%p721_p11), %s138_s22, 64, %s140_s25, [#allocation8]  }
  0x13   : > { %p1006_p3 = por %p86_p2, %p35_p13  ;;  %p733_p5 = scmp.lt.s32.totalorder %s908_s15, 2 }
  0x14   : > { %s150_s4 = sand.u32 1, %s904_s14   ;;  %s710_s5 = sshll.u32 %s908_s15, 3 }
  0x15   : > { %p37_p7 = por %p36_p0, %p35_p13  ;;  %s693_s6 = sshll.u32 %s150_s4, 3 }
  0x16   : > { %s159_s9 = scalar_lea.hbm %s1166_s0, %s710_s5  ;;  %s154_s11 = scalar_lea.vmem [#allocation4], %s693_s6 }
  0x17   : > { %s161_s10 = sshll.u32 %s159_s9, 4  ;;  %s163_s17 = sshll.u32 %s154_s11, 4  ;;  %s162_s10 = int_to_ptr.hbm [resolvable:$true] %s161_s10  ;;  %s164_s17 = int_to_ptr.vmem [resolvable:$true] %s163_s17 }
  0x18   : > { %p1016_p10 = pnand %p733_p5, %p37_p7  ;;  %s151_s21 = scalar_lea.sflag [#allocation5], %s150_s4 }
  0x19   : > { %s808_s22 = sshra.s32 %s162_s10, 4  ;;  %s815_s28 = scalar_lea.hbm %s1166_s0, 16  ;;  %s809_s22 = int_to_ptr.hbm [resolvable:$true] %s808_s22 }
  0x1a   : > { %s810_s24 = scalar_lea.hbm %s809_s22, 8  ;;  %p812_p11 = pneg %p1016_p10 }
  0x1b   : > { %p811_p2 = scmp.ne.s32.totalorder %s809_s22, %s810_s24  ;;  %p816_p0 = scmp.lt.s32.totalorder %s809_s22, %s1166_s0 }
  0x1c   : > { %p817_p5 = scmp.lt.s32.totalorder %s815_s28, %s810_s24 }
  0x1d   : > { %p813_p12 = pnand %p812_p11, %p811_p2 }
  0x1e   : > { %p818_p7 = por %p817_p5, %p816_p0 }
  0x1f   : > { %p814_p13 = pneg %p813_p12 }
  0x21   : > { %p819_p9 = pnand %p818_p7, %p814_p13 }
  0x23   : > { %822 = shalt.err (!%p819_p9)
}
  0x24   : > { %727 = dma.hbm_to_vmem [thread:$0]  (!%p1016_p10), %s162_s10, 128, %s164_s17, %s151_s21  }
  0x25   : > { %172 = sbr.rel (%p983_p8) target bundleno = 528 (0x210), region = 28  ;;  %s1033_s4 = sand.u32 (!%p983_p8), 1, %s900_s13  }
  0x26   : > { %s697_s7 = sshll.u32 (!%p983_p8), %s1033_s4, 3  ;;  %s175_s8 = scalar_lea.sflag (!%p983_p8), [#allocation5], %s1033_s4 }
  0x27   : > { %s178_s9 = scalar_lea.vmem (!%p983_p8), [#allocation4], %s697_s7 }
  0x2a   : > { %883 = dma.done.wait (%p970_p4), %s175_s8, 128  }
  0x2b   : > { %885 = vsyncadd (%p970_p4), %s175_s8, 4294967168 }
  0x2c   : > { %887 = dma.done.wait (%p42_p1), [#allocation8], 64  }
  0x2d   : > { %889 = vsyncadd (%p42_p1), [#allocation8], 4294967232  ;;  %v911_v0 = vmov 0.0   ;;  %v1047_v1 = vld [vmem:[%s178_s9] sm:$0xff]  ;;  %s912_s18 = smov 15   ;;  %s913_s23 = smov 1   ;;  %v219_v38 = vlaneseq }
  0x2e   : > { %215 = vst [vmem:[#allocation2] sm:$0xff] %v911_v0  ;;  %s914_s10 = smov 127   ;;  %s915_s11 = smov 113   ;;  %vm323_vm0 = vcmask 121856   ;;  %vm388_vm3 = vcmask 1039360   ;;  %vm348_vm4 = vcmask 7168  }
  0x2f   : > { %216 = vst [vmem:[#allocation2 + $0x8] sm:$0xff] %v911_v0  ;;  %s916_s17 = smov 112   ;;  %s917_s20 = smov 111   ;;  %v220_v40 = vand.u32 127, %v219_v38  ;;  %vm419_vm7 = vcmask 924672   ;;  %vm445_vm8 = vcmask 916480  }
  0x30   : > { %218 = vst [vmem:[#allocation2 + $0x4] sm:$0xff] %v1047_v1  ;;  %s918_s21 = smov 17   ;;  %s919_s22 = smov 16   ;;  %vm468_vm9 = vcmask 908288   ;;  %vm270_vm10 = vcmask 138240   ;;  %vm296_vm11 = vcmask 130048  }
  0x31   : > { %v221_v41 = vadd.s32 128, %v220_v40  ;;  %v226_v44 = vand.u32 15, %v220_v40  ;;  %vm492_vm12 = vcmask 1043456   ;;  %v477_v46 = vld [vmem:[#allocation7] sm:$0xf]  ;;  %vm488_vm13 = vcmask 293888  }
  0x32   : > { %s711_s24 = sshll.u32 %s961_s16, 3  ;;  %s204_s5 = scalar_lea.vmem [#allocation9], %s697_s7 }
  0x33   : > { %v233_v43 = vand.u32 15, %v221_v41  ;;  %vm1077_vm2 = vcmp.lt.s32.totalorder %v226_v44, 15  ;;  %vm1092_vm6 = vcmp.ge.s32.totalorder %v226_v44, 1  ;;  %s577_s28 = scalar_lea.hbm %s1168_s2, %s711_s24  ;;  %s579_s6 = sshll.u32 %s204_s5, 4  ;;  %s580_s6 = int_to_ptr.vmem [resolvable:$true] %s579_s6 }
  0x34   : > { %s581_s8 = sshll.u32 %s577_s28, 4  ;;  %s562_s7 = scalar_lea.sflag [#allocation6], %s1033_s4  ;;  %s582_s8 = int_to_ptr.hbm [resolvable:$true] %s581_s8 }
  0x35   : > { %vm1073_vm1 = vcmp.lt.s32.totalorder %v233_v43, 15  ;;  %vm1088_vm5 = vcmp.ge.s32.totalorder %v233_v43, 1  ;;  %s852_s9 = sshra.s32 %s582_s8, 4  ;;  %s853_s9 = int_to_ptr.hbm [resolvable:$true] %s852_s9 }
  0x36   : > { %v373_v16 = vld [vmem:[#allocation2 + $0xc] sm:$0xf]  ;;  %p859_p9 = scmp.lt.s32.totalorder %s853_s9, %s1168_s2 }
  0x37   : > { %v250_v2 = vld [vmem:[#allocation2] sm:$0xff]  ;;  %v251_v3 = vld [vmem:[#allocation2 + $0x8] sm:$0xf]  ;;  %v404_v20 = vld [vmem:[#allocation2 + $0xc] sm:$0xf] }
  0x38   : > { %258 = vst [vmem:[#allocation1] ss:$2 sm:$0xff] %v250_v2  ;;  %v280_v4 = vld [vmem:[#allocation2 + $0x8] sm:$0xf]  ;;  %v429_v24 = vld [vmem:[#allocation2 + $0xc] sm:$0xf] }
  0x39   : > { %260 = vst [vmem:[#allocation1 + $0x10] ss:$2 sm:$0xff] %v251_v3  ;;  %v304_v8 = vld [vmem:[#allocation2 + $0x8] sm:$0xf]  ;;  %v453_v28 = vld [vmem:[#allocation2 + $0xc] sm:$0xf] }
  0x3a   : > { %v333_v12 = vld [vmem:[#allocation2 + $0x8] sm:$0xf] }
  0x3f   : > { %v1050_v5 = vld.sshfl [vmem:[#allocation1] sm:$0xff pattern:$0x75316420]  ;;  %v1052_v6 = vld.sshfl [vmem:[#allocation1 + $0x8] sm:$0xff pattern:$0x75316420] }
  0x40   : > { %284 = vst [vmem:[#allocation1 + $0x1] ss:$2 sm:$0xff] %v250_v2  ;;  %v1054_v7 = vld.sshfl [vmem:[#allocation1 + $0x10] sm:$0xff pattern:$0x75316420] }
  0x41   : > { %286 = vst [vmem:[#allocation1 + $0x11] ss:$2 sm:$0xff] %v280_v4 }
  0x47   : > { %v1056_v9 = vld.sshfl [vmem:[#allocation1] sm:$0xff pattern:$0x75316420]  ;;  %v1058_v10 = vld.sshfl [vmem:[#allocation1 + $0x8] sm:$0xff pattern:$0x75316420] }
  0x48   : > { %311 = vst [vmem:[#allocation1] ss:$2 sm:$0xff] %v250_v2  ;;  %v1060_v11 = vld.sshfl [vmem:[#allocation1 + $0x10] sm:$0xff pattern:$0x75316420] }
  0x49   : > { %313 = vst [vmem:[#allocation1 + $0x10] ss:$2 sm:$0xff] %v304_v8 }
  0x4f   : > { %v315_v13 = vld.sshfl [vmem:[#allocation1 + $0x8] sm:$0xff pattern:$0x75316420]  ;;  %v314_v14 = vld.sshfl [vmem:[#allocation1] sm:$0xff pattern:$0x75316420] }
  0x50   : > { %319 = vrot.lane.b32.xlu1 %v315_v13, %s912_s18  ;;  %317 = vrot.lane.b32.xlu0 %v314_v14, %s912_s18  ;;  %336 = vst [vmem:[#allocation1] ss:$2 sm:$0xff] %v250_v2  ;;  %v316_v15 = vld.sshfl [vmem:[#allocation1 + $0x10] sm:$0xff pattern:$0x75316420] }
  0x51   : > { %321 = vrot.lane.b32.xlu2 %v316_v15, %s912_s18  ;;  %338 = vst [vmem:[#allocation1 + $0x10] ss:$2 sm:$0xff] %v333_v12  ;;  %s854_s18 = scalar_lea.hbm %s853_s9, 8 }
  0x52   : > { %p855_p1 = scmp.ne.s32.totalorder %s853_s9, %s854_s18 }
  0x54   : > { %p856_p4 = pnand %p855_p1, %p1006_p3 }
  0x56   : > { %p857_p8 = pneg %p856_p4 }
  0x57   : > { %v340_v17 = vld.sshfl [vmem:[#allocation1 + $0x8] sm:$0xff pattern:$0x75316420]  ;;  %v339_v18 = vld.sshfl [vmem:[#allocation1] sm:$0xff pattern:$0x75316420] }
  0x58   : > { %344 = vrot.lane.b32.xlu1 %v340_v17, %s913_s23  ;;  %342 = vrot.lane.b32.xlu0 %v339_v18, %s913_s23  ;;  %365 = vst [vmem:[#allocation1] ss:$2 sm:$0xff] %v1047_v1  ;;  %v341_v19 = vld.sshfl [vmem:[#allocation1 + $0x10] sm:$0xff pattern:$0x75316420] }
  0x59   : > { %346 = vrot.lane.b32.xlu2 %v341_v19, %s913_s23  ;;  %378 = vst [vmem:[#allocation1 + $0x10] ss:$2 sm:$0xff] %v373_v16 }
  0x5f   : > { %v366_v21 = vld.sshfl [vmem:[#allocation1] sm:$0xff pattern:$0x75316420]  ;;  %v367_v22 = vld.sshfl [vmem:[#allocation1 + $0x8] sm:$0xff pattern:$0x75316420] }
  0x60   : > { %370 = vst [vmem:[#allocation3 + $0x48] sm:$0xf] %v366_v21  ;;  %v381_v23 = vld.sshfl [vmem:[#allocation1 + $0x10] sm:$0xff pattern:$0x75316420] }
  0x61   : > { %371 = vst [vmem:[#allocation3 + $0x28] sm:$0xf] %v367_v22  ;;  %386 = vrot.lane.b32.xlu2 %v381_v23, %s914_s10 }
  0x62   : > { %376 = vst [vmem:[#allocation1] ss:$2 sm:$0xff] %v1047_v1 }
  0x63   : > { %409 = vst [vmem:[#allocation1 + $0x10] ss:$2 sm:$0xff] %v404_v20 }
  0x69   : > { %v379_v25 = vld.sshfl [vmem:[#allocation1] sm:$0xff pattern:$0x75316420]  ;;  %v380_v26 = vld.sshfl [vmem:[#allocation1 + $0x8] sm:$0xff pattern:$0x75316420] }
  0x6a   : > { %382 = vrot.lane.b32.xlu1 %v379_v25, %s914_s10  ;;  %407 = vst [vmem:[#allocation1] ss:$2 sm:$0xff] %v1047_v1  ;;  %v412_v27 = vld.sshfl [vmem:[#allocation1 + $0x10] sm:$0xff pattern:$0x75316420]  ;;  %384 = vrot.lane.b32.xlu2 %v380_v26, %s914_s10 }
  0x6b   : > { %435 = vst [vmem:[#allocation1 + $0x11] ss:$2 sm:$0xff] %v429_v24 }
  0x71   : > { %v411_v29 = vld.sshfl [vmem:[#allocation1 + $0x8] sm:$0xff pattern:$0x75316420]  ;;  %v410_v30 = vld.sshfl [vmem:[#allocation1] sm:$0xff pattern:$0x75316420] }
  0x72   : > { %415 = vrot.lane.b32.xlu1 %v411_v29, %s915_s11  ;;  %413 = vrot.lane.b32.xlu0 %v410_v30, %s915_s11  ;;  %v438_v31 = vld.sshfl [vmem:[#allocation1 + $0x10] sm:$0xff pattern:$0x75316420]  ;;  %433 = vst [vmem:[#allocation1 + $0x1] ss:$2 sm:$0xff] %v1047_v1 }
  0x73   : > { %458 = vst [vmem:[#allocation1 + $0x10] ss:$2 sm:$0xff] %v453_v28  ;;  %417 = vrot.lane.b32.xlu2 %v412_v27, %s915_s11  ;;  %s858_s11 = scalar_lea.hbm %s1168_s2, 16 }
  0x74   : > { %p860_p10 = scmp.lt.s32.totalorder %s858_s11, %s854_s18 }
  0x76   : > { %p861_p2 = por %p860_p10, %p859_p9 }
  0x78   : > { %p862_p11 = pnand %p861_p2, %p857_p8 }
  0x79   : > { %v436_v32 = vld.sshfl [vmem:[#allocation1] sm:$0xff pattern:$0x75316420]  ;;  %v437_v33 = vld.sshfl [vmem:[#allocation1 + $0x8] sm:$0xff pattern:$0x75316420] }
  0x7a   : > { %v461_v34 = vld.sshfl [vmem:[#allocation1 + $0x10] sm:$0xff pattern:$0x75316420]  ;;  %439 = vrot.lane.b32.xlu0 %v436_v32, %s916_s17  ;;  %456 = vst [vmem:[#allocation1] ss:$2 sm:$0xff] %v1047_v1 }
  0x7b   : > { %466 = vrot.lane.b32.xlu1 %v461_v34, %s917_s20  ;;  %443 = vrot.lane.b32.xlu2 %v438_v31, %s916_s17 }
  0x81   : > { %v459_v35 = vld.sshfl [vmem:[#allocation1] sm:$0xff pattern:$0x75316420]  ;;  %v460_v36 = vld.sshfl [vmem:[#allocation1 + $0x8] sm:$0xff pattern:$0x75316420] }
  0x82   : > { %462 = vrot.lane.b32.xlu0 %v459_v35, %s917_s20 }
  0x83   : > { %441 = vrot.lane.b32.xlu1 %v437_v33, %s916_s17  ;;  %268 = vrot.lane.b32.xlu2 %v1054_v7, %s918_s21 }
  0x8a   : > { %464 = vrot.lane.b32.xlu0 %v460_v36, %s917_s20 }
  0x8b   : > { %266 = vrot.lane.b32.xlu1 %v1052_v6, %s918_s21  ;;  %294 = vrot.lane.b32.xlu2 %v1060_v11, %s919_s22 }
  0x92   : > { %264 = vrot.lane.b32.xlu0 %v1050_v5, %s918_s21 }
  0x93   : > { %292 = vrot.lane.b32.xlu1 %v1058_v10, %s919_s22 }
  0x9a   : > { %290 = vrot.lane.b32.xlu0 %v1056_v9, %s919_s22 }
  0xab   : > { %v322_v37 = vpop.permute.xlu2 %321 }
  0xb3   : > { %v347_v39 = vpop.permute.xlu2 %346 }
  0xbb   : > { %v387_v42 = vpop.permute.xlu2 %386 }
  0xc2   : > { %v320_v47 = vpop.permute.xlu1 %319  ;;  %v318_v48 = vpop.permute.xlu0 %317 }
  0xc3   : > { %v325_v49 = vsel %vm323_vm0, %v320_v47, %v322_v37  ;;  %v324_v50 = vsel %vm323_vm0, %v318_v48, %v320_v47 }
  0xc4   : > { %v329_v51 = vsel %vm1073_vm1, %v325_v49, 0.0  ;;  %v328_v52 = vsel %vm1077_vm2, %v324_v50, 0.0  ;;  %v385_v53 = vpop.permute.xlu2 %384 }
  0xc5   : > { %331 = vst [vmem:[#allocation3 + $0x10] sm:$0xf] %v329_v51  ;;  %v390_v54 = vsel %vm388_vm3, %v385_v53, %v387_v42 }
  0xc6   : > { %330 = vst [vmem:[#allocation3 + $0x18] sm:$0xf] %v328_v52  ;;  %v394_v55 = vsel %vm1073_vm1, %v390_v54, 0.0 }
  0xc7   : > { %v398_v56 = vrot.slane %v394_v55, 4 }
  0xc9   : > { %402 = vst [vmem:[#allocation3 + $0x28] sm:$0xf0] %v398_v56 }
  0xca   : > { %v345_v59 = vpop.permute.xlu1 %344  ;;  %v343_v60 = vpop.permute.xlu0 %342 }
  0xcb   : > { %v350_v61 = vsel %vm348_vm4, %v345_v59, %v347_v39  ;;  %v349_v62 = vsel %vm348_vm4, %v343_v60, %v345_v59 }
  0xcc   : > { %v354_v63 = vsel %vm1088_vm5, %v350_v61, 0.0  ;;  %v353_v0 = vsel %vm1092_vm6, %v349_v62, 0.0 }
  0xcd   : > { %v358_v1 = vrot.slane %v354_v63, 4  ;;  %v357_v2 = vrot.slane %v353_v0, 4  ;;  %v418_v7 = vpop.permute.xlu2 %417 }
  0xcf   : > { %362 = vst [vmem:[#allocation3 + $0x10] sm:$0xf0] %v358_v1 }
  0xd0   : > { %361 = vst [vmem:[#allocation3 + $0x18] sm:$0xf0] %v357_v2  ;;  %v483_v41 = vld [vmem:[#allocation3 + $0x28] sm:$0xff] }
  0xd5   : > { %v444_v16 = vpop.permute.xlu2 %443 }
  0xd6   : > { %v481_v45 = vld [vmem:[#allocation3 + $0x10] sm:$0xff] }
  0xd7   : > { %v480_v43 = vld [vmem:[#allocation3 + $0x18] sm:$0xff] }
  0xdc   : > { %v383_v3 = vpop.permute.xlu1 %382 }
  0xdd   : > { %v389_v4 = vsel %vm388_vm3, %v383_v3, %v385_v53  ;;  %v269_v21 = vpop.permute.xlu2 %268 }
  0xde   : > { %v393_v5 = vsel %vm1077_vm2, %v389_v4, 0.0 }
  0xdf   : > { %v397_v6 = vrot.slane %v393_v5, 4 }
  0xe1   : > { %401 = vst [vmem:[#allocation3 + $0x48] sm:$0xf0] %v397_v6 }
  0xe4   : > { %v416_v8 = vpop.permute.xlu1 %415  ;;  %v414_v9 = vpop.permute.xlu0 %413 }
  0xe5   : > { %v420_v10 = vsel %vm419_vm7, %v414_v9, %v416_v8  ;;  %v421_v11 = vsel %vm419_vm7, %v416_v8, %v418_v7  ;;  %v295_v30 = vpop.permute.xlu2 %294 }
  0xe6   : > { %v424_v12 = vsel %vm1092_vm6, %v420_v10, 0.0  ;;  %v425_v13 = vsel %vm1088_vm5, %v421_v11, 0.0 }
  0xe7   : > { %426 = vst [vmem:[#allocation3 + $0x8] sm:$0xf] %v424_v12 }
  0xe8   : > { %427 = vst [vmem:[#allocation3 + $0x20] sm:$0xf] %v425_v13  ;;  %v482_v40 = vld [vmem:[#allocation3 + $0x48] sm:$0xff] }
  0xec   : > { %v440_v14 = vpop.permute.xlu0 %439 }
  0xed   : > { %v467_v15 = vpop.permute.xlu1 %466 }
  0xf4   : > { %v463_v17 = vpop.permute.xlu0 %462 }
  0xf5   : > { %v442_v18 = vpop.permute.xlu1 %441 }
  0xf6   : > { %v446_v19 = vsel %vm445_vm8, %v440_v14, %v442_v18  ;;  %v447_v20 = vsel %vm445_vm8, %v442_v18, %v444_v16 }
  0xf7   : > { %450 = vst [vmem:[#allocation3 + $0x8] sm:$0xf0] %v446_v19 }
  0xf8   : > { %451 = vst [vmem:[#allocation3 + $0x20] sm:$0xf0] %v447_v20 }
  0xfc   : > { %v465_v22 = vpop.permute.xlu0 %464 }
  0xfd   : > { %v469_v23 = vsel %vm468_vm9, %v463_v17, %v465_v22  ;;  %v470_v24 = vsel %vm468_vm9, %v465_v22, %v467_v15  ;;  %v267_v25 = vpop.permute.xlu1 %266 }
  0xfe   : > { %v473_v26 = vsel %vm1077_vm2, %v469_v23, 0.0  ;;  %v474_v27 = vsel %vm1073_vm1, %v470_v24, 0.0  ;;  %v272_v28 = vsel %vm270_vm10, %v267_v25, %v269_v21  ;;  %v484_v38 = vld [vmem:[#allocation3 + $0x8] sm:$0xff] }
  0xff   : > { %475 = vst [vmem:[#allocation3 + $0x40] sm:$0xf] %v473_v26  ;;  %v276_v29 = vsel %vm1088_vm5, %v272_v28, 0.0  ;;  %v485_v39 = vld [vmem:[#allocation3 + $0x20] sm:$0xff] }
 0x100   : > { %476 = vst [vmem:[#allocation3 + $0x38] sm:$0xf] %v474_v27 }
 0x101   : > { %278 = vst [vmem:[#allocation3] sm:$0xf] %v276_v29 }
 0x104   : > { %v265_v31 = vpop.permute.xlu0 %264 }
 0x105   : > { %v271_v32 = vsel %vm270_vm10, %v265_v31, %v267_v25  ;;  %v293_v33 = vpop.permute.xlu1 %292 }
 0x106   : > { %v275_v34 = vsel %vm1092_vm6, %v271_v32, 0.0  ;;  %v298_v35 = vsel %vm296_vm11, %v293_v33, %v295_v30  ;;  %v486_v36 = vld [vmem:[#allocation3 + $0x40] sm:$0xf] }
 0x107   : > { %277 = vst [vmem:[#allocation3 + $0x30] sm:$0xf] %v275_v34  ;;  %701 = vmatpush.msk.msra.mxu0 %vm492_vm12, %v486_v36  ;;  %v487_v37 = vld [vmem:[#allocation3 + $0x38] sm:$0xf] }
 0x108   : > { %302 = vst [vmem:[#allocation3] sm:$0xf0] %v298_v35  ;;  %703 = vmatpush.msk.msra.mxu1 %vm492_vm12, %v487_v37 }
 0x109   : > { %511 = vmatpush.msra.mxu0 %v484_v38 }
 0x10a   : > { %531 = vmatpush.msra.mxu1 %v485_v39 }
 0x10b   : > { %512 = vmatpush.msra.mxu0 %v482_v40 }
 0x10c   : > { %532 = vmatpush.msra.mxu1 %v483_v41  ;;  %v291_v42 = vpop.permute.xlu0 %290 }
 0x10d   : > { %v297_v44 = vsel %vm296_vm11, %v291_v42, %v293_v33  ;;  %513 = vmatpush.msra.mxu0 %v480_v43 }
 0x10e   : > { %301 = vst [vmem:[#allocation3 + $0x30] sm:$0xf0] %v297_v44  ;;  %533 = vmatpush.msra.mxu1 %v481_v45 }
 0x10f   : > { %v479_v47 = vld [vmem:[#allocation3] sm:$0xff] }
 0x110   : > { %534 = vmatpush.msra.mxu1 %v479_v47 }
 0x111   : > { %704 = vmatmul.msk.f32.vlgmr.msra.gmra.mxu1 %vm488_vm13, %v477_v46 }
 0x115   : > { %v478_v48 = vld [vmem:[#allocation3 + $0x30] sm:$0xff] }
 0x116   : > { %514 = vmatpush.msra.mxu0 %v478_v48 }
 0x117   : > { %702 = vmatmul.msk.f32.vlgmr.msra.gmra.mxu0 %vm488_vm13, %v477_v46 }
 0x18e   : > { %v536_v49 = vpop.f32.mrf.mxu1 }
 0x18f   : > { %v541_v50 = vrot.slane %v536_v49, 4  ;;  %v553_v51 = vmul.f32 %v536_v49, %v536_v49  ;;  %v546_v52 = vsel %vm492_vm12, %v536_v49, 0.0 }
 0x191   : > { %v555_v57 = vsel %vm492_vm12, %v553_v51, 0.0 }
 0x194   : > { %v516_v53 = vpop.f32.mrf.mxu0 }
 0x195   : > { %v542_v54 = vsel %vm492_vm12, %v516_v53, %v541_v50  ;;  %v545_v55 = vsel %vm492_vm12, %v516_v53, 0.0  ;;  %v552_v56 = vmul.f32 %v516_v53, %v516_v53 }
 0x196   : > { %544 = vst [vmem:[%s204_s5] sm:$0xff] %v542_v54  ;;  %v547_v58 = vadd.f32 %v546_v52, %v545_v55 }
 0x197   : > { %v554_v59 = vsel %vm492_vm12, %v552_v56, 0.0 }
 0x198   : > { %865 = shalt.err (!%p862_p11)
}
 0x199   : > { %718 = dma.vmem_to_hbm [thread:$0]  (%p1006_p3), %s580_s6, 128, %s582_s8, %s562_s7   ;;  %548 = vadd.xlane.f32.xlu0 %v547_v58  ;;  %v556_v60 = vadd.f32 %v555_v57, %v554_v59  ;;  %vm550_vm14 = vcmask 3072   ;;  %vm559_vm15 = vcmask 11272  }
 0x19a   : > { %p211_p12 = scmp.lt.s32.totalorder %s961_s16, 1 }
 0x19b   : > { %557 = vadd.xlane.f32.xlu1 %v556_v60 }
 0x19c   : > { %s1189_s16 = smov (!%p211_p12, %s961_s16), 1 }
 0x19d   : > { %s700_s4 = sshll.u32 %s1189_s16, 2 }
 0x19e   : > { %s214_s24 = scalar_lea.vmem %s1169_s3, %s700_s4 }
 0x20c   : > { %v549_v61 = vpop.xlane.xlu0 %548 }
 0x20d   : > { %551 = vst.msk [vmem:[%s214_s24] sm:$0xf] %vm550_vm14, %v549_v61 }
 0x20e   : > { %v558_v62 = vpop.xlane.xlu1 %557 }
 0x20f   : > { %560 = vst.msk [vmem:[%s214_s24] sm:$0xf] %vm559_vm15, %v558_v62 }
 0x210 PF: > { %s596_s30 = sand.u32 1, %s896_s12   ;;  %p1183_p3 = scmp.ge.s32.totalorder %s908_s15, 2 }
 0x211   : > { %s597_s16 = scalar_lea.sflag [#allocation6], %s596_s30 }
 0x212   : > { %p729_p13 = pnand %p1183_p3, %p975_p6 }
 0x214   : > { %p730_p0 = pneg %p729_p13 }
 0x216   : > { %891 = dma.done.wait (%p730_p0), %s597_s16, 128  }
 0x217   : > { %893 = vsyncadd (%p730_p0), %s597_s16, 4294967168  ;;  %p18_p5 = scmp.ge.s32.totalorder %s993_s26, 4   ;;  %s1184_s12 = smov %s900_s13 }
 0x218   : > { %s1185_s13 = smov %s904_s14  ;;  %s1186_s14 = smov %s1002_s29 }
 0x219   : > { %s1187_s15 = smov %s993_s26  ;;  %20 = sbr.rel (!%p18_p5) target bundleno = 6 (0x6), region = 99 }
 0x21e   :  { %610 = vsyncpa [#allocation5], 1 }
 0x21f   :  { %612 = vsyncpa [#allocation5 + $0x1], 1 }
 0x220   :  { %613 = vsyncpa [#allocation8], 1 }
 0x221   :  { %614 = vsyncpa [#allocation6], 1 }
 0x222   :  { %616 = vsyncpa [#allocation6 + $0x1], 1 }

</bundles_post_ra>
